<compile_context>
chip_gen: v5e
topology: v5e:2x2
jax: 0.10.0
libtpu: 0.0.40
codegen_flags: <defaults>
</compile_context>

<pallas_src>
import functools

import numpy as np
import jax
import jax.numpy as jnp
from jax.experimental import pallas as pl
from jax.experimental.pallas import tpu as pltpu

LANE = 128
SUBLANE = 8

_HAS_BUFFERED = hasattr(pl, "Buffered")
_BUFFERED_FALLBACK_ERRORS = (TypeError, NotImplementedError, ValueError)
if hasattr(pltpu, "LoweringException"):
    _BUFFERED_FALLBACK_ERRORS = _BUFFERED_FALLBACK_ERRORS + (pltpu.LoweringException,)


def _round_up(x, m):
    return ((x + m - 1) // m) * m


def _erf(x, *, approx_recip=False):
    # Abramowitz & Stegun 7.1.26 rational approximation, |err| < 1.5e-7 (f32 noise).
    a1, a2, a3, a4, a5 = 0.254829592, -0.284496736, 1.421413741, -1.453152027, 1.061405429
    p = 0.3275911
    sgn = jnp.where(x >= 0.0, 1.0, -1.0)
    ax = jnp.abs(x)
    denom = 1.0 + p * ax
    if approx_recip:
        t = pl.reciprocal(denom, approx=True)       # EUP slot, frees VALU
    else:
        t = 1.0 / denom
    poly = ((((a5 * t + a4) * t + a3) * t + a2) * t + a1) * t
    return sgn * (1.0 - poly * jnp.exp(-ax * ax))


def _gelu_exact(x, *, approx_recip=False):
    # nn.GELU() default (erf-based, approximate='none')
    return 0.5 * x * (1.0 + _erf(x * 0.7071067811865476, approx_recip=approx_recip))


def _silu(x):
    return x * jax.nn.sigmoid(x)


def ffn_kernel(x_ref, scale_ref, shift_ref,
               w1_ref, b1_ref, w2_ref, b2_ref,
               gamma_ref, beta_ref, wo_ref, bo_ref,
               o_ref, acc_ref, *, true_d):
    """Grid = (B, T tiles, F chunks).  acc_ref accumulates linear2 over F chunks."""
    f = pl.program_id(2)
    nf = pl.num_programs(2)

    x = x_ref[...].astype(jnp.float32)                          # (TT, Dp)

    # ---- linear1 (+bias) + exact GELU for this F-chunk; bf16 MXU, f32 acc ----
    h = jnp.dot(x.astype(jnp.bfloat16), w1_ref[...],
                preferred_element_type=jnp.float32) + b1_ref[...]
    h = _gelu_exact(h, approx_recip=True)                       # (TT, TF) f32, dropout == id

    # ---- linear2 partial product, accumulated across F chunks ----
    partial = jnp.dot(h.astype(jnp.bfloat16), w2_ref[...],
                      preferred_element_type=jnp.float32)

    @pl.when(f == 0)
    def _first():
        acc_ref[...] = partial                                  # no zero-init pass

    @pl.when(f > 0)
    def _accumulate():
        acc_ref[...] += partial

    @pl.when(f == nf - 1)
    def _finalize():
        # Sequential chain (y -> yn -> hh -> proj) keeps at most ~2 (TT, Dp) f32 live.
        y = acc_ref[...] + b2_ref[...]                          # (TT, Dp) f32

        # ---- StylizationBlock: one-pass LayerNorm over the true (unpadded) D ----
        # Padded lanes of y are exactly zero, so plain sums over Dp are correct.
        inv_d = jnp.float32(1.0 / true_d)
        s1 = jnp.sum(y, axis=-1, keepdims=True)
        s2 = jnp.sum(y * y, axis=-1, keepdims=True)
        mean = s1 * inv_d
        var = s2 * inv_d - mean * mean
        y = (y - mean) * jax.lax.rsqrt(var + 1e-5)
        y = y * gamma_ref[...] + beta_ref[...]                  # gamma/beta padded with 0

        # Per-batch scale/shift rows ((1, Dp)) broadcast along sublanes.
        y = _silu(y * (1.0 + scale_ref[...]) + shift_ref[...])  # dropout == id
        proj = jnp.dot(y.astype(jnp.bfloat16), wo_ref[...],
                       preferred_element_type=jnp.float32) + bo_ref[...]

        o_ref[...] = (x + proj).astype(o_ref.dtype)             # residual in f32


def _pad2(a, rows, cols):
    r, c = a.shape
    return jnp.pad(a, ((0, rows - r), (0, cols - c)))


def _vmem_budget_bytes():
    """Per-generation VMEM budget: ~48 MiB on v7x (64 MiB), ~96 MiB on v5e/v6e (128 MiB)."""
    try:
        cap = int(pltpu.get_tpu_info().vmem_capacity_bytes)
    except Exception:
        cap = 64 * 1024 * 1024      # conservative default (v7x)
    return min((cap * 3) // 4, 96 * 1024 * 1024)


def ffn_pallas(x, emb, params, *, t_tile=256, f_tile=512):
    B, T, D = x.shape
    F = params["w1"].shape[1]
    x_item = jnp.dtype(x.dtype).itemsize

    # ---- lane-dense / MXU-friendly padded sizes and tiles ----
    Dp = _round_up(D, LANE)
    TT = min(t_tile, _round_up(T, SUBLANE))
    Tp = _round_up(T, TT)
    # v7x has 2 TensorCores: make sure the 'parallel' grid has >= 2 tiles when possible.
    if B * (Tp // TT) < 2 and Tp >= 2 * SUBLANE and (Tp // 2) % SUBLANE == 0:
        TT = Tp // 2

    budget = _vmem_budget_bytes()
    Fp128 = _round_up(F, LANE)
    # Working-set estimate with weights VMEM-resident (single-buffered), activations
    # double-buffered, the (TT, Fp) GELU intermediate, acc scratch and finalize temps.
    resident_need = (
        (2 * Dp * Fp128 + Dp * Dp) * 2           # w1, w2, wo (bf16)
        + 4 * (Fp128 + 5 * Dp)                   # b1, b2, gamma, beta, bo (f32)
        + 2 * 2 * TT * Dp * x_item               # x + out tiles, double-buffered
        + 2 * 2 * Dp * 4                         # scale/shift rows, double-buffered
        + TT * Fp128 * 4                         # GELU intermediate
        + 4 * TT * Dp * 4                        # acc scratch + finalize temporaries
    )
    if resident_need <= budget:
        TF = Fp128                               # weights resident, single F step
    else:
        TF = min(f_tile, Fp128)                  # fall back to F chunking
    Fp = _round_up(F, TF)
    n_f = Fp // TF
    n_t = Tp // TT

    # ---- precompute per-batch stylization scale/shift in the wrapper (tiny, f32) ----
    e = _silu(emb.astype(jnp.float32))
    scale = e @ params["wsc"] + params["bsc"]                    # (B, D)
    shift = e @ params["wsh"] + params["bsh"]                    # (B, D)
    scale_p = jnp.pad(scale[:, None, :], ((0, 0), (0, 0), (0, Dp - D)))   # (B, 1, Dp)
    shift_p = jnp.pad(shift[:, None, :], ((0, 0), (0, 0), (0, Dp - D)))

    # ---- pad activations / weights with zeros; cast matmul weights to bf16 ----
    xp = jnp.pad(x, ((0, 0), (0, Tp - T), (0, Dp - D)))          # (B, Tp, Dp), x.dtype

    w1p = _pad2(params["w1"], Dp, Fp).astype(jnp.bfloat16)
    b1p = _pad2(params["b1"], 1, Fp)
    w2p = _pad2(params["w2"], Fp, Dp).astype(jnp.bfloat16)
    b2p = _pad2(params["b2"], 1, Dp)
    gammap = _pad2(params["gamma"], 1, Dp)                       # padded lanes -> 0
    betap = _pad2(params["beta"], 1, Dp)
    wop = _pad2(params["wo"], Dp, Dp).astype(jnp.bfloat16)
    bop = _pad2(params["bo"], 1, Dp)

    n_row_tiles = B * n_t
    cost = pl.CostEstimate(
        flops=int(2 * B * Tp * (2 * Dp * Fp + Dp * Dp)),
        transcendentals=int(B * Tp * (Fp + Dp)),
        bytes_accessed=int(
            2 * B * Tp * Dp * x_item                                   # x read + out write
            + 2 * B * Dp * 4                                           # scale/shift tables
            + 2 * (Dp * Fp + Fp * Dp) * (n_row_tiles if n_f > 1 else 1)  # w1/w2 traffic
            + 2 * Dp * Dp                                              # wo
            + 4 * (Fp + 4 * Dp)),                                      # biases/gamma/beta
    )

    def make_call(use_buffered):
        def inv(shape, index_map):
            # Grid-invariant operand: single-buffer it (halves its VMEM footprint).
            if use_buffered:
                return pl.BlockSpec(shape, index_map, pipeline_mode=pl.Buffered(1))
            return pl.BlockSpec(shape, index_map)

        # w1/b1/w2 are grid-invariant only when there is a single F chunk.
        w_spec = inv if n_f == 1 else (lambda s, m: pl.BlockSpec(s, m))

        in_specs = [
            pl.BlockSpec((None, TT, Dp), lambda b, t, f: (b, t, 0)),     # x
            pl.BlockSpec((None, 1, Dp), lambda b, t, f: (b, 0, 0)),      # scale (per batch)
            pl.BlockSpec((None, 1, Dp), lambda b, t, f: (b, 0, 0)),      # shift (per batch)
            w_spec((Dp, TF), lambda b, t, f: (0, f)),                    # w1 (F-chunked)
            w_spec((1, TF), lambda b, t, f: (0, f)),                     # b1 (F-chunked)
            w_spec((TF, Dp), lambda b, t, f: (f, 0)),                    # w2 (F-chunked)
            inv((1, Dp), lambda b, t, f: (0, 0)),                        # b2
            inv((1, Dp), lambda b, t, f: (0, 0)),                        # gamma
            inv((1, Dp), lambda b, t, f: (0, 0)),                        # beta
            inv((Dp, Dp), lambda b, t, f: (0, 0)),                       # wo
            inv((1, Dp), lambda b, t, f: (0, 0)),                        # bo
        ]

        grid_spec = pltpu.PrefetchScalarGridSpec(
            num_scalar_prefetch=0,
            grid=(B, n_t, n_f),
            in_specs=in_specs,
            out_specs=pl.BlockSpec((None, TT, Dp), lambda b, t, f: (b, t, 0)),
            scratch_shapes=[pltpu.VMEM((TT, Dp), jnp.float32)],          # linear2 accumulator
        )

        return pl.pallas_call(
            functools.partial(ffn_kernel, true_d=D),
            out_shape=jax.ShapeDtypeStruct((B, Tp, Dp), x.dtype),
            grid_spec=grid_spec,
            compiler_params=pltpu.CompilerParams(
                dimension_semantics=("parallel", "parallel", "arbitrary"),
                vmem_limit_bytes=int(budget),
            ),
            cost_estimate=cost,
        )(xp, scale_p, shift_p, w1p, b1p, w2p, b2p, gammap, betap, wop, bop)

    if _HAS_BUFFERED:
        try:
            out_p = make_call(True)
        except _BUFFERED_FALLBACK_ERRORS:
            # pipeline_mode / Buffered(1) not supported by this Pallas build.
            out_p = make_call(False)
    else:
        out_p = make_call(False)

    return out_p[:, :T, :D]


# ---------------------------- references ------------------------------------


def ffn_reference_matched(x, emb, params):
    """Same numerics as the kernel (bf16 MXU operands, f32 accumulation, A&S erf
    GELU, one-pass LayerNorm) in plain JAX — tight correctness check."""
    bf = jnp.bfloat16
    w1 = params["w1"].astype(bf)
    w2 = params["w2"].astype(bf)
    wo = params["wo"].astype(bf)
    D = x.shape[-1]

    h = _gelu_exact(jnp.dot(x.astype(bf), w1, preferred_element_type=jnp.float32)
                    + params["b1"])
    y = jnp.dot(h.astype(bf), w2, preferred_element_type=jnp.float32) + params["b2"]

    e = _silu(emb)
    scale = e @ params["wsc"] + params["bsc"]
    shift = e @ params["wsh"] + params["bsh"]

    s1 = jnp.sum(y, axis=-1, keepdims=True)
    s2 = jnp.sum(y * y, axis=-1, keepdims=True)
    mean = s1 / D
    var = s2 / D - mean * mean
    yn = (y - mean) * jax.lax.rsqrt(var + 1e-5)
    yn = yn * params["gamma"] + params["beta"]

    hh = _silu(yn * (1.0 + scale[:, None, :]) + shift[:, None, :])
    proj = jnp.dot(hh.astype(bf), wo, preferred_element_type=jnp.float32) + params["bo"]
    return x + proj


def ffn_reference_f32(x, emb, params):
    """Pure-f32 JAX port of the PyTorch forward (eval mode) — loose sanity check."""
    h = jax.nn.gelu(x @ params["w1"] + params["b1"], approximate=False)
    y = h @ params["w2"] + params["b2"]
    e = jax.nn.silu(emb)
    scale = e @ params["wsc"] + params["bsc"]
    shift = e @ params["wsh"] + params["bsh"]
    mean = y.mean(-1, keepdims=True)
    var = ((y - mean) ** 2).mean(-1, keepdims=True)
    yn = (y - mean) / jnp.sqrt(var + 1e-5)
    yn = yn * params["gamma"] + params["beta"]
    hh = jax.nn.silu(yn * (1.0 + scale[:, None, :]) + shift[:, None, :])
    return x + hh @ params["wo"] + params["bo"]


def make_params(key, latent_dim, ffn_dim, time_embed_dim):
    ks = jax.random.split(key, 10)

    def u(k, shape, fan_in):
        bound = 1.0 / np.sqrt(fan_in)
        return jax.random.uniform(k, shape, jnp.float32, -bound, bound)

    D, F, E = latent_dim, ffn_dim, time_embed_dim
    # Linear weights stored pre-transposed as (in, out) so kernels do x @ W.
    return {
        "w1": u(ks[0], (D, F), D), "b1": u(ks[1], (1, F), D),
        "w2": u(ks[2], (F, D), F), "b2": u(ks[3], (1, D), F),    # zero_module in reference
        "wsc": u(ks[4], (E, D), E), "bsc": u(ks[5], (1, D), E),  # emb_layers cols [:D] -> scale
        "wsh": u(ks[6], (E, D), E), "bsh": u(ks[7], (1, D), E),  # emb_layers cols [D:] -> shift
        "gamma": jnp.ones((1, D), jnp.float32),                  # LayerNorm defaults
        "beta": jnp.zeros((1, D), jnp.float32),
        "wo": u(ks[8], (D, D), D), "bo": u(ks[9], (1, D), D),    # zero_module in reference
    }


if __name__ == "__main__":
    B, T = 2, 8
    latent_dim, ffn_dim, time_embed_dim = 32, 64, 32

    key = jax.random.PRNGKey(0)
    kx, ke, kp = jax.random.split(key, 3)
    x = jax.random.normal(kx, (B, T, latent_dim), jnp.float32)
    emb = jax.random.normal(ke, (B, time_embed_dim), jnp.float32)
    params = make_params(kp, latent_dim, ffn_dim, time_embed_dim)

    out = jax.block_until_ready(ffn_pallas(x, emb, params))

    # Check against a reference with matching numerics (bf16 MXU operands); tolerance
    # covers the EUP approx-reciprocal used inside the kernel's erf.
    ref_m = ffn_reference_matched(x, emb, params)
    np.testing.assert_allclose(np.asarray(out), np.asarray(ref_m), rtol=1e-2, atol=1e-2)

    # Loose sanity check against the exact f32 module math (bf16 rounding tolerance).
    ref_f = ffn_reference_f32(x, emb, params)
    np.testing.assert_allclose(np.asarray(out), np.asarray(ref_f), rtol=5e-2, atol=5e-2)

    print("KERNEL_OK")
</pallas_src>

<mosaic_0001>
module attributes {stable_mosaic.version = 11 : i64} {
  func.func @ffn_kernel(%arg0: i32, %arg1: i32, %arg2: i32, %arg3: memref<1x8x128xf32, #tpu.memory_space<vmem>>, %arg4: memref<1x1x128xf32, #tpu.memory_space<vmem>>, %arg5: memref<1x1x128xf32, #tpu.memory_space<vmem>>, %arg6: memref<128x128xbf16, #tpu.memory_space<vmem>>, %arg7: memref<1x128xf32, #tpu.memory_space<vmem>>, %arg8: memref<128x128xbf16, #tpu.memory_space<vmem>>, %arg9: memref<1x128xf32, #tpu.memory_space<vmem>>, %arg10: memref<1x128xf32, #tpu.memory_space<vmem>>, %arg11: memref<1x128xf32, #tpu.memory_space<vmem>>, %arg12: memref<128x128xbf16, #tpu.memory_space<vmem>>, %arg13: memref<1x128xf32, #tpu.memory_space<vmem>>, %arg14: memref<1x8x128xf32, #tpu.memory_space<vmem>>, %arg15: memref<8x128xf32, #tpu.memory_space<vmem>>) attributes {dimension_semantics = [#tpu.dimension_semantics<parallel>, #tpu.dimension_semantics<parallel>, #tpu.dimension_semantics<arbitrary>], iteration_bounds = array<i64: 2, 1, 1>, scalar_prefetch = 0 : i64, scratch_operands = 1 : i64, tpu.core_type = #tpu.core_type<tc>, window_params = [{transform_indices = @transform_0, window_bounds = array<i64: 1, 8, 128>}, {transform_indices = @transform_1, window_bounds = array<i64: 1, 1, 128>}, {transform_indices = @transform_2, window_bounds = array<i64: 1, 1, 128>}, {pipeline_mode = #tpu.pipeline_mode<synchronous>, transform_indices = @transform_3, window_bounds = array<i64: 128, 128>}, {pipeline_mode = #tpu.pipeline_mode<synchronous>, transform_indices = @transform_4, window_bounds = array<i64: 1, 128>}, {pipeline_mode = #tpu.pipeline_mode<synchronous>, transform_indices = @transform_5, window_bounds = array<i64: 128, 128>}, {pipeline_mode = #tpu.pipeline_mode<synchronous>, transform_indices = @transform_6, window_bounds = array<i64: 1, 128>}, {pipeline_mode = #tpu.pipeline_mode<synchronous>, transform_indices = @transform_7, window_bounds = array<i64: 1, 128>}, {pipeline_mode = #tpu.pipeline_mode<synchronous>, transform_indices = @transform_8, window_bounds = array<i64: 1, 128>}, {pipeline_mode = #tpu.pipeline_mode<synchronous>, transform_indices = @transform_9, window_bounds = array<i64: 128, 128>}, {pipeline_mode = #tpu.pipeline_mode<synchronous>, transform_indices = @transform_10, window_bounds = array<i64: 1, 128>}, {transform_indices = @transform_11, window_bounds = array<i64: 1, 8, 128>}]} {
    %c0 = arith.constant 0 : index
    %c0_0 = arith.constant 0 : index
    %c0_1 = arith.constant 0 : index
    %0 = vector.load %arg3[%c0, %c0_0, %c0_1] : memref<1x8x128xf32, #tpu.memory_space<vmem>>, vector<1x8x128xf32>
    %1 = vector.shape_cast %0 : vector<1x8x128xf32> to vector<8x128xf32>
    %2 = arith.truncf %1 : vector<8x128xf32> to vector<8x128xbf16>
    %c0_2 = arith.constant 0 : index
    %c0_3 = arith.constant 0 : index
    %3 = vector.load %arg6[%c0_2, %c0_3] : memref<128x128xbf16, #tpu.memory_space<vmem>>, vector<128x128xbf16>
    %cst = arith.constant dense<0.000000e+00> : vector<8x128xf32>
    %4 = tpu.matmul %2, %3, %cst {dimension_numbers = #tpu.dot_dimension_numbers<[1], [0], [0], [1], [0, 0, 1, 1], [], []>} : vector<8x128xbf16>, vector<128x128xbf16>, vector<8x128xf32> -> vector<8x128xf32>
    %c0_4 = arith.constant 0 : index
    %c0_5 = arith.constant 0 : index
    %5 = vector.load %arg7[%c0_4, %c0_5] : memref<1x128xf32, #tpu.memory_space<vmem>>, vector<1x128xf32>
    %6 = vector.broadcast %5 : vector<1x128xf32> to vector<8x128xf32>
    %7 = arith.addf %4, %6 : vector<8x128xf32>
    %cst_6 = arith.constant 5.000000e-01 : f32
    %8 = vector.broadcast %cst_6 : f32 to vector<8x128xf32>
    %9 = arith.mulf %8, %7 : vector<8x128xf32>
    %cst_7 = arith.constant 0.707106769 : f32
    %10 = vector.broadcast %cst_7 : f32 to vector<8x128xf32>
    %11 = arith.mulf %7, %10 : vector<8x128xf32>
    %cst_8 = arith.constant 0.000000e+00 : f32
    %12 = vector.broadcast %cst_8 : f32 to vector<8x128xf32>
    %13 = arith.cmpf oge, %11, %12 : vector<8x128xf32>
    %cst_9 = arith.constant 1.000000e+00 : f32
    %cst_10 = arith.constant -1.000000e+00 : f32
    %14 = vector.broadcast %cst_9 : f32 to vector<8x128xf32>
    %15 = vector.broadcast %cst_10 : f32 to vector<8x128xf32>
    %16 = arith.select %13, %14, %15 : vector<8x128xi1>, vector<8x128xf32>
    %17 = math.absf %11 : vector<8x128xf32>
    %cst_11 = arith.constant 0.327591091 : f32
    %18 = vector.broadcast %cst_11 : f32 to vector<8x128xf32>
    %19 = arith.mulf %18, %17 : vector<8x128xf32>
    %cst_12 = arith.constant 1.000000e+00 : f32
    %20 = vector.broadcast %cst_12 : f32 to vector<8x128xf32>
    %21 = arith.addf %20, %19 : vector<8x128xf32>
    %22 = tpu.reciprocal %21 {approx = true} : vector<8x128xf32> -> vector<8x128xf32>
    %cst_13 = arith.constant 1.06140542 : f32
    %23 = vector.broadcast %cst_13 : f32 to vector<8x128xf32>
    %24 = arith.mulf %23, %22 : vector<8x128xf32>
    %cst_14 = arith.constant -1.45315206 : f32
    %25 = vector.broadcast %cst_14 : f32 to vector<8x128xf32>
    %26 = arith.addf %24, %25 : vector<8x128xf32>
    %27 = arith.mulf %26, %22 : vector<8x128xf32>
    %cst_15 = arith.constant 1.42141378 : f32
    %28 = vector.broadcast %cst_15 : f32 to vector<8x128xf32>
    %29 = arith.addf %27, %28 : vector<8x128xf32>
    %30 = arith.mulf %29, %22 : vector<8x128xf32>
    %cst_16 = arith.constant -0.284496725 : f32
    %31 = vector.broadcast %cst_16 : f32 to vector<8x128xf32>
    %32 = arith.addf %30, %31 : vector<8x128xf32>
    %33 = arith.mulf %32, %22 : vector<8x128xf32>
    %cst_17 = arith.constant 0.254829586 : f32
    %34 = vector.broadcast %cst_17 : f32 to vector<8x128xf32>
    %35 = arith.addf %33, %34 : vector<8x128xf32>
    %36 = arith.mulf %35, %22 : vector<8x128xf32>
    %cst_18 = arith.constant 0.000000e+00 : f32
    %37 = vector.broadcast %cst_18 : f32 to vector<8x128xf32>
    %38 = arith.subf %37, %17 : vector<8x128xf32>
    %39 = arith.mulf %38, %17 : vector<8x128xf32>
    %40 = math.exp %39 : vector<8x128xf32>
    %41 = arith.mulf %36, %40 : vector<8x128xf32>
    %cst_19 = arith.constant 1.000000e+00 : f32
    %42 = vector.broadcast %cst_19 : f32 to vector<8x128xf32>
    %43 = arith.subf %42, %41 : vector<8x128xf32>
    %44 = arith.mulf %16, %43 : vector<8x128xf32>
    %cst_20 = arith.constant 1.000000e+00 : f32
    %45 = vector.broadcast %cst_20 : f32 to vector<8x128xf32>
    %46 = arith.addf %45, %44 : vector<8x128xf32>
    %47 = arith.mulf %9, %46 : vector<8x128xf32>
    %48 = arith.truncf %47 : vector<8x128xf32> to vector<8x128xbf16>
    %c0_21 = arith.constant 0 : index
    %c0_22 = arith.constant 0 : index
    %49 = vector.load %arg8[%c0_21, %c0_22] : memref<128x128xbf16, #tpu.memory_space<vmem>>, vector<128x128xbf16>
    %cst_23 = arith.constant dense<0.000000e+00> : vector<8x128xf32>
    %50 = tpu.matmul %48, %49, %cst_23 {dimension_numbers = #tpu.dot_dimension_numbers<[1], [0], [0], [1], [0, 0, 1, 1], [], []>} : vector<8x128xbf16>, vector<128x128xbf16>, vector<8x128xf32> -> vector<8x128xf32>
    %c0_i32 = arith.constant 0 : i32
    %51 = arith.cmpi eq, %arg2, %c0_i32 : i32
    %52 = arith.extui %51 : i1 to i32
    %c0_i32_24 = arith.constant 0 : i32
    %53 = arith.cmpi ne, %52, %c0_i32_24 : i32
    scf.if %53 {
      %c0_29 = arith.constant 0 : index
      %c0_30 = arith.constant 0 : index
      %60 = vector.load %arg15[%c0_29, %c0_30] : memref<8x128xf32, #tpu.memory_space<vmem>>, vector<8x128xf32>
      tpu.vector_store %arg15[%c0_29, %c0_30], %50 {strides = array<i32>} : memref<8x128xf32, #tpu.memory_space<vmem>>, vector<8x128xf32>,
    } else {
    }
    %c0_i32_25 = arith.constant 0 : i32
    %54 = arith.cmpi sgt, %arg2, %c0_i32_25 : i32
    %55 = arith.extui %54 : i1 to i32
    %c0_i32_26 = arith.constant 0 : i32
    %56 = arith.cmpi ne, %55, %c0_i32_26 : i32
    scf.if %56 {
      %c0_29 = arith.constant 0 : index
      %c0_30 = arith.constant 0 : index
      %60 = vector.load %arg15[%c0_29, %c0_30] : memref<8x128xf32, #tpu.memory_space<vmem>>, vector<8x128xf32>
      %61 = arith.addf %60, %50 : vector<8x128xf32>
      %c0_31 = arith.constant 0 : index
      %c0_32 = arith.constant 0 : index
      %62 = vector.load %arg15[%c0_31, %c0_32] : memref<8x128xf32, #tpu.memory_space<vmem>>, vector<8x128xf32>
      tpu.vector_store %arg15[%c0_31, %c0_32], %61 {strides = array<i32>} : memref<8x128xf32, #tpu.memory_space<vmem>>, vector<8x128xf32>,
    } else {
    }
    %c0_i32_27 = arith.constant 0 : i32
    %57 = arith.cmpi eq, %arg2, %c0_i32_27 : i32
    %58 = arith.extui %57 : i1 to i32
    %c0_i32_28 = arith.constant 0 : i32
    %59 = arith.cmpi ne, %58, %c0_i32_28 : i32
    scf.if %59 {
      %c0_29 = arith.constant 0 : index
      %c0_30 = arith.constant 0 : index
      %60 = vector.load %arg15[%c0_29, %c0_30] : memref<8x128xf32, #tpu.memory_space<vmem>>, vector<8x128xf32>
      %c0_31 = arith.constant 0 : index
      %c0_32 = arith.constant 0 : index
      %61 = vector.load %arg9[%c0_31, %c0_32] : memref<1x128xf32, #tpu.memory_space<vmem>>, vector<1x128xf32>
      %62 = vector.broadcast %61 : vector<1x128xf32> to vector<8x128xf32>
      %63 = arith.addf %60, %62 : vector<8x128xf32>
      %cst_33 = arith.constant dense<0.000000e+00> : vector<8xf32>
      %64 = vector.multi_reduction <add>, %63, %cst_33 [1] : vector<8x128xf32> to vector<8xf32>
      %65 = vector.shape_cast %64 : vector<8xf32> to vector<8x1xf32>
      %66 = arith.mulf %63, %63 : vector<8x128xf32>
      %cst_34 = arith.constant dense<0.000000e+00> : vector<8xf32>
      %67 = vector.multi_reduction <add>, %66, %cst_34 [1] : vector<8x128xf32> to vector<8xf32>
      %68 = vector.shape_cast %67 : vector<8xf32> to vector<8x1xf32>
      %cst_35 = arith.constant 3.125000e-02 : f32
      %69 = vector.broadcast %cst_35 : f32 to vector<8x1xf32>
      %70 = arith.mulf %65, %69 : vector<8x1xf32>
      %cst_36 = arith.constant 3.125000e-02 : f32
      %71 = vector.broadcast %cst_36 : f32 to vector<8x1xf32>
      %72 = arith.mulf %68, %71 : vector<8x1xf32>
      %73 = arith.mulf %70, %70 : vector<8x1xf32>
      %74 = arith.subf %72, %73 : vector<8x1xf32>
      %75 = vector.broadcast %70 : vector<8x1xf32> to vector<8x128xf32>
      %76 = arith.subf %63, %75 : vector<8x128xf32>
      %cst_37 = arith.constant 9.99999974E-6 : f32
      %77 = vector.broadcast %cst_37 : f32 to vector<8x1xf32>
      %78 = arith.addf %74, %77 : vector<8x1xf32>
      %79 = math.rsqrt %78 : vector<8x1xf32>
      %80 = vector.broadcast %79 : vector<8x1xf32> to vector<8x128xf32>
      %81 = arith.mulf %76, %80 : vector<8x128xf32>
      %c0_38 = arith.constant 0 : index
      %c0_39 = arith.constant 0 : index
      %82 = vector.load %arg10[%c0_38, %c0_39] : memref<1x128xf32, #tpu.memory_space<vmem>>, vector<1x128xf32>
      %83 = vector.broadcast %82 : vector<1x128xf32> to vector<8x128xf32>
      %84 = arith.mulf %81, %83 : vector<8x128xf32>
      %c0_40 = arith.constant 0 : index
      %c0_41 = arith.constant 0 : index
      %85 = vector.load %arg11[%c0_40, %c0_41] : memref<1x128xf32, #tpu.memory_space<vmem>>, vector<1x128xf32>
      %86 = vector.broadcast %85 : vector<1x128xf32> to vector<8x128xf32>
      %87 = arith.addf %84, %86 : vector<8x128xf32>
      %c0_42 = arith.constant 0 : index
      %c0_43 = arith.constant 0 : index
      %c0_44 = arith.constant 0 : index
      %88 = vector.load %arg4[%c0_42, %c0_43, %c0_44] : memref<1x1x128xf32, #tpu.memory_space<vmem>>, vector<1x1x128xf32>
      %89 = vector.shape_cast %88 : vector<1x1x128xf32> to vector<1x128xf32>
      %cst_45 = arith.constant 1.000000e+00 : f32
      %90 = vector.broadcast %cst_45 : f32 to vector<1x128xf32>
      %91 = arith.addf %90, %89 : vector<1x128xf32>
      %92 = vector.broadcast %91 : vector<1x128xf32> to vector<8x128xf32>
      %93 = arith.mulf %87, %92 : vector<8x128xf32>
      %c0_46 = arith.constant 0 : index
      %c0_47 = arith.constant 0 : index
      %c0_48 = arith.constant 0 : index
      %94 = vector.load %arg5[%c0_46, %c0_47, %c0_48] : memref<1x1x128xf32, #tpu.memory_space<vmem>>, vector<1x1x128xf32>
      %95 = vector.shape_cast %94 : vector<1x1x128xf32> to vector<1x128xf32>
      %96 = vector.broadcast %95 : vector<1x128xf32> to vector<8x128xf32>
      %97 = arith.addf %93, %96 : vector<8x128xf32>
      %98 = arith.negf %97 : vector<8x128xf32>
      %99 = math.exp %98 : vector<8x128xf32>
      %cst_49 = arith.constant 1.000000e+00 : f32
      %100 = vector.broadcast %cst_49 : f32 to vector<8x128xf32>
      %101 = arith.addf %100, %99 : vector<8x128xf32>
      %102 = arith.divf %100, %101 : vector<8x128xf32>
      %103 = arith.mulf %97, %102 : vector<8x128xf32>
      %104 = arith.truncf %103 : vector<8x128xf32> to vector<8x128xbf16>
      %c0_50 = arith.constant 0 : index
      %c0_51 = arith.constant 0 : index
      %105 = vector.load %arg12[%c0_50, %c0_51] : memref<128x128xbf16, #tpu.memory_space<vmem>>, vector<128x128xbf16>
      %cst_52 = arith.constant dense<0.000000e+00> : vector<8x128xf32>
      %106 = tpu.matmul %104, %105, %cst_52 {dimension_numbers = #tpu.dot_dimension_numbers<[1], [0], [0], [1], [0, 0, 1, 1], [], []>} : vector<8x128xbf16>, vector<128x128xbf16>, vector<8x128xf32> -> vector<8x128xf32>
      %c0_53 = arith.constant 0 : index
      %c0_54 = arith.constant 0 : index
      %107 = vector.load %arg13[%c0_53, %c0_54] : memref<1x128xf32, #tpu.memory_space<vmem>>, vector<1x128xf32>
      %108 = vector.broadcast %107 : vector<1x128xf32> to vector<8x128xf32>
      %109 = arith.addf %106, %108 : vector<8x128xf32>
      %110 = arith.addf %1, %109 : vector<8x128xf32>
      %c0_55 = arith.constant 0 : index
      %c0_56 = arith.constant 0 : index
      %c0_57 = arith.constant 0 : index
      %111 = vector.load %arg14[%c0_55, %c0_56, %c0_57] : memref<1x8x128xf32, #tpu.memory_space<vmem>>, vector<1x8x128xf32>
      %112 = vector.shape_cast %111 : vector<1x8x128xf32> to vector<8x128xf32>
      %113 = vector.shape_cast %110 : vector<8x128xf32> to vector<1x8x128xf32>
      tpu.vector_store %arg14[%c0_55, %c0_56, %c0_57], %113 {strides = array<i32>} : memref<1x8x128xf32, #tpu.memory_space<vmem>>, vector<1x8x128xf32>,
    } else {
    }
    return
  }
  func.func @transform_0(%arg0: i32, %arg1: i32, %arg2: i32) -> (i32, i32, i32) {
    %c0_i32 = arith.constant 0 : i32
    %c0_i32_0 = arith.constant 0 : i32
    return %arg0, %arg1, %c0_i32 : i32, i32, i32
  }
  func.func @transform_1(%arg0: i32, %arg1: i32, %arg2: i32) -> (i32, i32, i32) {
    %c0_i32 = arith.constant 0 : i32
    %c0_i32_0 = arith.constant 0 : i32
    %c0_i32_1 = arith.constant 0 : i32
    return %arg0, %c0_i32, %c0_i32_0 : i32, i32, i32
  }
  func.func @transform_2(%arg0: i32, %arg1: i32, %arg2: i32) -> (i32, i32, i32) {
    %c0_i32 = arith.constant 0 : i32
    %c0_i32_0 = arith.constant 0 : i32
    %c0_i32_1 = arith.constant 0 : i32
    return %arg0, %c0_i32, %c0_i32_0 : i32, i32, i32
  }
  func.func @transform_3(%arg0: i32, %arg1: i32, %arg2: i32) -> (i32, i32) {
    %c0_i32 = arith.constant 0 : i32
    %c0_i32_0 = arith.constant 0 : i32
    return %c0_i32, %arg2 : i32, i32
  }
  func.func @transform_4(%arg0: i32, %arg1: i32, %arg2: i32) -> (i32, i32) {
    %c0_i32 = arith.constant 0 : i32
    %c0_i32_0 = arith.constant 0 : i32
    return %c0_i32, %arg2 : i32, i32
  }
  func.func @transform_5(%arg0: i32, %arg1: i32, %arg2: i32) -> (i32, i32) {
    %c0_i32 = arith.constant 0 : i32
    %c0_i32_0 = arith.constant 0 : i32
    return %arg2, %c0_i32 : i32, i32
  }
  func.func @transform_6(%arg0: i32, %arg1: i32, %arg2: i32) -> (i32, i32) {
    %c0_i32 = arith.constant 0 : i32
    %c0_i32_0 = arith.constant 0 : i32
    %c0_i32_1 = arith.constant 0 : i32
    return %c0_i32, %c0_i32_0 : i32, i32
  }
  func.func @transform_7(%arg0: i32, %arg1: i32, %arg2: i32) -> (i32, i32) {
    %c0_i32 = arith.constant 0 : i32
    %c0_i32_0 = arith.constant 0 : i32
    %c0_i32_1 = arith.constant 0 : i32
    return %c0_i32, %c0_i32_0 : i32, i32
  }
  func.func @transform_8(%arg0: i32, %arg1: i32, %arg2: i32) -> (i32, i32) {
    %c0_i32 = arith.constant 0 : i32
    %c0_i32_0 = arith.constant 0 : i32
    %c0_i32_1 = arith.constant 0 : i32
    return %c0_i32, %c0_i32_0 : i32, i32
  }
  func.func @transform_9(%arg0: i32, %arg1: i32, %arg2: i32) -> (i32, i32) {
    %c0_i32 = arith.constant 0 : i32
    %c0_i32_0 = arith.constant 0 : i32
    %c0_i32_1 = arith.constant 0 : i32
    return %c0_i32, %c0_i32_0 : i32, i32
  }
  func.func @transform_10(%arg0: i32, %arg1: i32, %arg2: i32) -> (i32, i32) {
    %c0_i32 = arith.constant 0 : i32
    %c0_i32_0 = arith.constant 0 : i32
    %c0_i32_1 = arith.constant 0 : i32
    return %c0_i32, %c0_i32_0 : i32, i32
  }
  func.func @transform_11(%arg0: i32, %arg1: i32, %arg2: i32) -> (i32, i32, i32) {
    %c0_i32 = arith.constant 0 : i32
    %c0_i32_0 = arith.constant 0 : i32
    return %arg0, %arg1, %c0_i32 : i32, i32, i32
  }
}

</mosaic_0001>

<bundles_post_ra>
// kernel: tpu_custom_call.1
= control target key start
LH: loop header
LB: loop body
LE: loop exit
PB: predicated region body
PF: predicated region fallthrough
CT: control target
= control target key end

     0   :  { %s1945_s0 = inlined_call_operand.hbm [shape: f32[2,8,128], index: 0, kind: input, shape index: {}]   ;;  %s1946_s1 = inlined_call_operand.hbm [shape: f32[2,1,128], index: 1, kind: input, shape index: {}]   ;;  %s1947_s2 = inlined_call_operand.hbm [shape: f32[2,1,128], index: 2, kind: input, shape index: {}]   ;;  %s1948_s3 = inlined_call_operand.hbm [shape: bf16[128,128], index: 3, kind: input, shape index: {}]   ;;  %s1949_s4 = inlined_call_operand.vmem [shape: f32[1,128], index: 4, kind: input, shape index: {}]   ;;  %s1950_s5 = inlined_call_operand.hbm [shape: bf16[128,128], index: 5, kind: input, shape index: {}]   ;;  %s1951_s6 = inlined_call_operand.vmem [shape: f32[1,128], index: 6, kind: input, shape index: {}]   ;;  %s1952_s7 = inlined_call_operand.vmem [shape: f32[1,128], index: 7, kind: input, shape index: {}]   ;;  %s1953_s8 = inlined_call_operand.vmem [shape: f32[1,128], index: 8, kind: input, shape index: {}]   ;;  %s1954_s9 = inlined_call_operand.hbm [shape: bf16[128,128], index: 9, kind: input, shape index: {}]   ;;  %s1955_s10 = inlined_call_operand.vmem [shape: f32[1,128], index: 10, kind: input, shape index: {}]   ;;  %s1956_s11 = inlined_call_operand.hbm [shape: f32[2,8,128], index: 11, kind: output, shape index: {}]  }
   0x1   :  { %1970 = sst [smem:[#allocation27_spill]] %s1946_s1 }
   0x2   :  { %1971 = sst [smem:[#allocation28_spill]] %s1948_s3 }
   0x3   :  { %1972 = sst [smem:[#allocation29_spill]] %s1950_s5 }
   0x4   :  { %1973 = sst [smem:[#allocation30_spill]] %s1954_s9 }
   0x5   :  { %1974 = sst [smem:[#allocation31_spill]] %s1955_s10 }
   0x6   :  { %1975 = sst [smem:[#allocation32_spill]] %s1956_s11 }
   0x7   :  { %16 = vsyncpa [#allocation4], 0 }
   0x8   :  { %18 = vsyncpa [#allocation4 + $0x1], 0 }
   0x9   :  { %19 = vsyncpa [#allocation7], 0 }
   0xa   :  { %21 = vsyncpa [#allocation7 + $0x1], 0 }
   0xb   :  { %22 = vsyncpa [#allocation10], 0 }
   0xc   :  { %23 = vsyncpa [#allocation13], 0 }
   0xd   :  { %24 = vsyncpa [#allocation5], 0 }
   0xe   :  { %26 = vsyncpa [#allocation5 + $0x1], 0  ;;  %s1715_s17 = smov 0   ;;  %s1717_s18 = smov 0  }
   0xf   :  { %s1719_s19 = smov 0   ;;  %s1721_s20 = smov 0  }
  0x10   :  { %s1723_s21 = smov 0   ;;  %s1725_s22 = smov 0  }
  0x11 LB: > { %1976 = sst [smem:[#allocation20_spill]] %s1627_s17  ;;  %s1746_s23 = sadd.s32 4294967295, %s1647_s22   ;;  %s1647_s22 = sphi %s1725_s22, %s32_s22   ;;  %s1643_s21 = sphi %s1723_s21, %s2008_s21   ;;  %s1639_s20 = sphi %s1721_s20, %s2007_s20   ;;  %s1635_s19 = sphi %s1719_s19, %s2003_s19   ;;  %s1631_s18 = sphi %s1717_s18, %s2006_s18   ;;  %s1627_s17 = sphi %s1715_s17, %s2005_s17  }
  0x12   : > { %1977 = sst [smem:[#allocation21_spill]] %s1635_s19  ;;  %p1112_p0 = scmp.ge.s32.totalorder %s1647_s22, 1 }
  0x13   : > { %1978 = sst [smem:[#allocation22_spill]] %s1647_s22  ;;  %p74_p1 = scmp.eq.s32.totalorder %s1746_s23, 0 }
  0x14   : > { %p347_p2 = scmp.lt.s32.totalorder %s1647_s22, 3  ;;  %s1979_s3 = sld [smem:[#allocation28_spill]] }
  0x15   : > { %s1649_s28 = smov [#allocation9]   ;;  %s1957_s12 = smov 64  }
  0x16   : > { %p1754_p3 = pnand %p1112_p0, %p347_p2  ;;  %s362_s29 = sshll.u32 %s1649_s28, 4  ;;  %s363_s29 = int_to_ptr.vmem [resolvable:$true] %s362_s29 }
  0x17   : > { %s1959_s13 = smov 4   ;;  %s1111_s14 = sadd.s32 4294967294, %s1647_s22  }
  0x18   : > { %p1271_p4 = pneg %p1754_p3  ;;  %s51_s15 = sadd.s32 1, %s1643_s21 }
  0x19   : > { %s60_s16 = sadd.s32 1, %s1635_s19  ;;  %p53_p7 = scmp.ge.s32.totalorder %s51_s15, 2 }
  0x1a   : > { %s360_s26 = sshll.u32 %s1979_s3, 4  ;;  %p1762_p5 = pnand %p1271_p4, %p74_p1  ;;  %s361_s26 = int_to_ptr.hbm [resolvable:$true] %s360_s26 }
  0x1b   : > { %p67_p8 = scmp.ne.s32.totalorder %s1635_s19, %s1631_s18  ;;  %p68_p9 = scmp.eq.s32.totalorder %s1647_s22, 0 }
  0x1c   : > { %1274 = dma.hbm_to_vmem [thread:$0]  (!%p1762_p5), %s361_s26, 1024, %s363_s29, [#allocation10], %s1957_s12, %s1957_s12, %s1959_s13  }
  0x1d   : > { %p73_p10 = scmp.ne.s32.totalorder %s1631_s18, %s1627_s17  ;;  %s2010_s15 = smov (%p53_p7, %s51_s15), 0 }
  0x1e   : > { %1982 = sst [smem:[#allocation23_spill]] %s2010_s15  ;;  %p69_p11 = por %p68_p9, %p67_p8 }
  0x1f   : > { %p1784_p12 = por %p74_p1, %p73_p10  ;;  %s55_s25 = ssub.s32 %s1643_s21, %s2010_s15 }
  0x20   : > { %p334_p13 = scmp.eq.s32.totalorder %s1746_s23, 1  ;;  %p58_p0 = scmp.eq.s32.totalorder %s55_s25, 0 }
  0x21   : > { %p340_p2 = scmp.eq.s32.totalorder %s1111_s14, 1  ;;  %p1298_p6 = scmp.lt.s32.totalorder %s1647_s22, 2 }
  0x22   : > { %p1791_p4 = por %p334_p13, %p67_p8  ;;  %s1804_s12 = sand.u32 1, %s1635_s19  }
  0x23   : > { %s1797_s28 = scalar_select %p58_p0, %s1635_s19, %s60_s16  }
  0x24   : > { %s1984_s26 = scalar_select %p1791_p4, 1, 0 }
  0x25   : > { %1986 = sst [smem:[#allocation25_spill]] %s1797_s28  ;;  %p1799_p7 = por %p340_p2, %p73_p10 }
  0x26   : > { %1985 = sst [smem:[#allocation24_spill]] %s1984_s26  ;;  %p1806_p9 = pnand %p1298_p6, %p69_p11 }
  0x27   : > { %s1987_s29 = scalar_select %p1799_p7, 1, 0 }
  0x28   : > { %s445_s14 = sand.u32 1, %s1647_s22   ;;  %s1990_s1 = sld [smem:[#allocation27_spill]] }
  0x29   : > { %1988 = sst [smem:[#allocation26_spill]] %s1987_s29  ;;  %s448_s28 = scalar_lea.vmem [#allocation6], %s1804_s12 }
  0x2a   : > { %s455_s17 = sshll.u32 %s448_s28, 4  ;;  %s1816_s19 = scalar_lea.sflag [#allocation7], %s445_s14  ;;  %s456_s17 = int_to_ptr.vmem [resolvable:$true] %s455_s17 }
  0x2b   : > { %s1991_s5 = sld [smem:[#allocation29_spill]]  ;;  %s1652_s3 = smov [#allocation11]  }
  0x2c   : > { %s385_s25 = sshll.u32 %s1652_s3, 4  ;;  %s1992_s9 = sld [smem:[#allocation30_spill]]  ;;  %s386_s25 = int_to_ptr.vmem [resolvable:$true] %s385_s25 }
  0x2d   : > { %s1993_s11 = smov 4   ;;  %s1994_s14 = smov 64  }
  0x2e   : > { %s451_s15 = scalar_lea.hbm %s1990_s1, %s1643_s21  ;;  %s1118_s29 = sshll.u32 %s1804_s12, 3 }
  0x2f   : > { %s453_s16 = sshll.u32 %s451_s15, 4  ;;  %s468_s10 = scalar_lea.hbm %s1947_s2, %s1643_s21  ;;  %s454_s16 = int_to_ptr.hbm [resolvable:$true] %s453_s16 }
  0x30   : > { %1287 = dma.hbm_to_vmem [thread:$0]  (!%p1806_p9), %s454_s16, 16, %s456_s17, %s1816_s19  }
  0x31   : > { %s383_s22 = sshll.u32 %s1991_s5, 4  ;;  %s1653_s17 = smov [#allocation12]   ;;  %s384_s22 = int_to_ptr.hbm [resolvable:$true] %s383_s22 }
  0x32   : > { %s406_s1 = sshll.u32 %s1992_s9, 4  ;;  %s408_s26 = sshll.u32 %s1653_s17, 4  ;;  %s407_s1 = int_to_ptr.hbm [resolvable:$true] %s406_s1  ;;  %s409_s26 = int_to_ptr.vmem [resolvable:$true] %s408_s26 }
  0x33   : > { %1277 = dma.hbm_to_vmem [thread:$0]  (!%p1762_p5), %s384_s22, 1024, %s386_s25, [#allocation10], %s1994_s14, %s1994_s14, %s1993_s11  }
  0x34   : > { %1280 = dma.hbm_to_vmem [thread:$0]  (!%p1762_p5), %s407_s1, 1024, %s409_s26, [#allocation13], %s1994_s14, %s1994_s14, %s1993_s11  }
  0x35   : > { %s1119_s16 = sshll.u32 %s1643_s21, 3  ;;  %s429_s22 = scalar_lea.vmem [#allocation3], %s1118_s29 }
  0x36   : > { %s434_s28 = scalar_lea.hbm %s1945_s0, %s1119_s16  ;;  %s438_s25 = sshll.u32 %s429_s22, 4  ;;  %s439_s25 = int_to_ptr.vmem [resolvable:$true] %s438_s25 }
  0x37   : > { %s436_s5 = sshll.u32 %s434_s28, 4  ;;  %s426_s17 = scalar_lea.sflag [#allocation4], %s1804_s12  ;;  %s437_s5 = int_to_ptr.hbm [resolvable:$true] %s436_s5 }
  0x38   : > { %1284 = dma.hbm_to_vmem [thread:$0]  (!%p1806_p9), %s437_s5, 128, %s439_s25, %s426_s17  }
  0x39   : > { %s465_s1 = scalar_lea.vmem [#allocation8], %s1804_s12  ;;  %s470_s14 = sshll.u32 %s468_s10, 4  ;;  %s471_s14 = int_to_ptr.hbm [resolvable:$true] %s470_s14 }
  0x3a   : > { %s472_s11 = sshll.u32 %s465_s1, 4  ;;  %481 = sbr.rel (%p1754_p3) target bundleno = 734 (0x2de), region = 64  ;;  %s473_s11 = int_to_ptr.vmem [resolvable:$true] %s472_s11 }
  0x3b   : > { %1290 = dma.hbm_to_vmem [thread:$0]  (!%p1806_p9), %s471_s14, 16, %s473_s11, %s1816_s19  }
  0x3c   : > { %s1856_s26 = sand.u32 (!%p1754_p3), 1, %s1631_s18  }
  0x3d   : > { %s1121_s5 = sshll.u32 (!%p1754_p3), %s1856_s26, 3  ;;  %s484_s9 = scalar_lea.sflag (!%p1754_p3), [#allocation4], %s1856_s26 }
  0x3e   : > { %s487_s12 = scalar_lea.vmem (!%p1754_p3), [#allocation3], %s1121_s5 }
  0x3f   : > { %1606 = dma.done.wait (%p1784_p12), %s484_s9, 128  }
  0x40   : > { %1608 = vsyncadd (%p1784_p12), %s484_s9, 4294967168  ;;  %s493_s10 = sand.u32 1, %s1746_s23   ;;  %s496_s27 = scalar_lea.vmem [#allocation6], %s1856_s26 }
  0x41   : > { %s494_s19 = scalar_lea.sflag [#allocation7], %s493_s10 }
  0x42   : > { %1610 = dma.done.wait (%p1784_p12), %s494_s19, 32  }
  0x43   : > { %1612 = vsyncadd (%p1784_p12), %s494_s19, 4294967264  ;;  %s505_s13 = scalar_lea.vmem [#allocation8], %s1856_s26 }
  0x44   : > { %1614 = dma.done.wait (%p74_p1), [#allocation10], 2048  }
  0x45   : > { %1616 = vsyncadd (%p74_p1), [#allocation10], 4294965248 }
  0x46   : > { %1618 = dma.done.wait (%p74_p1), [#allocation13], 1024  }
  0x47   : > { %1620 = vsyncadd (%p74_p1), [#allocation13], 4294966272  ;;  %v1234_v0 = vld [vmem:[#allocation9 + $0x38] sm:$0xff]  ;;  %v1233_v1 = vld [vmem:[#allocation9 + $0x30] sm:$0xff]  ;;  %v1654_v42 = vmov -1.0   ;;  %s1224_s25 = sshll.u32 %s1639_s20, 3 }
  0x48   : > { %645 = vmatpush.bf16.msra.mxu0 %v1234_v0  ;;  %v1232_v2 = vld [vmem:[#allocation9 + $0x28] sm:$0xff]  ;;  %v1231_v3 = vld [vmem:[#allocation9 + $0x20] sm:$0xff]  ;;  %v1230_v4 = vld [vmem:[#allocation9 + $0x18] sm:$0xff]  ;;  %s1995_s1 = sld [smem:[#allocation31_spill]]  ;;  %s570_s19 = scalar_lea.vmem [#allocation14], %s1121_s5 }
  0x49   : > { %v1229_v5 = vld [vmem:[#allocation9 + $0x10] sm:$0xff]  ;;  %v1228_v6 = vld [vmem:[#allocation9 + $0x8] sm:$0xff]  ;;  %v1227_v7 = vld [vmem:[#allocation9] sm:$0xff]  ;;  %s1996_s9 = sld [smem:[#allocation32_spill]]  ;;  %s931_s20 = scalar_lea.sflag [#allocation5], %s1856_s26 }
  0x4a   : > { %v1881_v8 = vld [vmem:[%s487_s12] sm:$0xff]  ;;  %v1239_v13 = vld [vmem:[#allocation11 + $0x20] sm:$0xff] }
  0x4b   : > { %v576_v9 = vpack.c.bf16 %v1881_v8, %v1881_v8  ;;  %v1242_v10 = vld [vmem:[#allocation11 + $0x38] sm:$0xff]  ;;  %v1241_v11 = vld [vmem:[#allocation11 + $0x30] sm:$0xff]  ;;  %v1240_v12 = vld [vmem:[#allocation11 + $0x28] sm:$0xff] }
  0x4c   : > { %646 = vmatpush.bf16.msra.mxu0 %v1233_v1  ;;  %749 = vmatpush.bf16.msra.mxu1 %v1242_v10  ;;  %v1238_v14 = vld [vmem:[#allocation11 + $0x18] sm:$0xff]  ;;  %v1357_v15 = vld [vmem:[%s1949_s4] ss:$0 sm:$0xff]  ;;  %v1237_v16 = vld [vmem:[#allocation11 + $0x10] sm:$0xff] }
  0x4d   : > { %v1236_v20 = vld [vmem:[#allocation11 + $0x8] sm:$0xff]  ;;  %v1235_v23 = vld [vmem:[#allocation11] sm:$0xff]  ;;  %v1250_v55 = vld [vmem:[#allocation12 + $0x38] sm:$0xff] }
  0x4e   : > { %v1358_v49 = vld [vmem:[%s1951_s6] ss:$0 sm:$0xff]  ;;  %915 = vmatpush.bf16.msra.mxu2 %v1250_v55  ;;  %v1249_v56 = vld [vmem:[#allocation12 + $0x30] sm:$0xff]  ;;  %v1247_v63 = vld [vmem:[#allocation12 + $0x20] sm:$0xff] }
  0x4f   : > { %v1248_v58 = vld [vmem:[#allocation12 + $0x28] sm:$0xff]  ;;  %v1246_v1 = vld [vmem:[#allocation12 + $0x18] sm:$0xff]  ;;  %s942_s10 = scalar_lea.hbm %s1996_s9, %s1224_s25  ;;  %s1573_s5 = scalar_lea.hbm %s1996_s9, 16 }
  0x50   : > { %647 = vmatpush.bf16.msra.mxu0 %v1232_v2  ;;  %750 = vmatpush.bf16.msra.mxu1 %v1241_v11  ;;  %v1245_v2 = vld [vmem:[#allocation12 + $0x10] sm:$0xff]  ;;  %v815_v11 = vld [vmem:[%s496_s27] sm:$0x1]  ;;  %s944_s27 = sshll.u32 %s570_s19, 4  ;;  %s945_s27 = int_to_ptr.vmem [resolvable:$true] %s944_s27 }
  0x52   : > { %916 = vmatpush.bf16.msra.mxu2 %v1249_v56 }
  0x54   : > { %648 = vmatpush.bf16.msra.mxu0 %v1231_v3  ;;  %751 = vmatpush.bf16.msra.mxu1 %v1240_v12 }
  0x56   : > { %917 = vmatpush.bf16.msra.mxu2 %v1248_v58 }
  0x58   : > { %649 = vmatpush.bf16.msra.mxu0 %v1230_v4  ;;  %752 = vmatpush.bf16.msra.mxu1 %v1239_v13 }
  0x5a   : > { %918 = vmatpush.bf16.msra.mxu2 %v1247_v63 }
  0x5c   : > { %650 = vmatpush.bf16.msra.mxu0 %v1229_v5  ;;  %753 = vmatpush.bf16.msra.mxu1 %v1238_v14  ;;  %v1244_v5 = vld [vmem:[#allocation12 + $0x8] sm:$0xff] }
  0x5d   : > { %v1359_v14 = vld [vmem:[%s1952_s7] ss:$0 sm:$0xff] }
  0x5e   : > { %919 = vmatpush.bf16.msra.mxu2 %v1246_v1 }
  0x60   : > { %651 = vmatpush.bf16.msra.mxu0 %v1228_v6  ;;  %754 = vmatpush.bf16.msra.mxu1 %v1237_v16 }
  0x62   : > { %920 = vmatpush.bf16.msra.mxu2 %v1245_v2 }
  0x64   : > { %652 = vmatpush.bf16.msra.mxu0 %v1227_v7  ;;  %755 = vmatpush.bf16.msra.mxu1 %v1236_v20 }
  0x66   : > { %921 = vmatpush.bf16.msra.mxu2 %v1244_v5 }
  0x67   : > { %653 = vmatmul.bf16.vlgmr.msra.gmra.mxu0 %v576_v9  ;;  %v1243_v9 = vld [vmem:[#allocation12] sm:$0xff] }
  0x68   : > { %756 = vmatpush.bf16.msra.mxu1 %v1235_v23 }
  0x6a   : > { %922 = vmatpush.bf16.msra.mxu2 %v1243_v9 }
  0xe4   : > { %v654_v17 = vpop.f32.mrf.mxu0 }
  0xe5   : > { %v655_v18 = vadd.f32 %v1357_v15, %v654_v17  ;;  %v816_v15 = vadd.f32 1.0, %v815_v11 }
  0xe7   : > { %v659_v19 = vmul.f32 0.70710677, %v655_v18  ;;  %v658_v45 = vmul.f32 0.5, %v655_v18  ;;  %v1360_v18 = vld [vmem:[%s1953_s8] ss:$0 sm:$0xff]  ;;  %v818_v20 = vperm.slane %v816_v15, 0 }
  0xe9   : > { %v662_v21 = vand.u32 2147483647, %v659_v19  ;;  %vm660_vm0 = vcmp.ge.f32.partialorder %v659_v19, 0.0 }
  0xea   : > { %v661_v43 = vsel %vm660_vm0, 1.0, %v1654_v42 }
  0xeb   : > { %v663_v22 = vmul.f32 0.3275911, %v662_v21  ;;  %v675_v27 = vsub.f32 0.0, %v662_v21 }
  0xec   : > { %v656_v24 = vpop.f32.mrf.mxu0 }
  0xed   : > { %v664_v25 = vadd.f32 1.0, %v663_v22  ;;  %v676_v30 = vmul.f32 %v675_v27, %v662_v21  ;;  %v1361_v22 = vld [vmem:[%s505_s13] ss:$0 sm:$0xff]  ;;  %s946_s13 = sshll.u32 %s942_s10, 4  ;;  %s947_s13 = int_to_ptr.hbm [resolvable:$true] %s946_s13 }
  0xee   : > { %s1567_s23 = sshra.s32 %s947_s13, 4  ;;  %s1568_s23 = int_to_ptr.hbm [resolvable:$true] %s1567_s23 }
  0xef   : > { %1363 = vrcp.f32 %v664_v25  ;;  %v677_v33 = vmul.f32 1.442695, %v676_v30  ;;  %s1569_s24 = scalar_lea.hbm %s1568_s23, 8  ;;  %p1574_p6 = scmp.lt.s32.totalorder %s1568_s23, %s1996_s9 }
  0xf0   : > { %p1570_p1 = scmp.ne.s32.totalorder %s1568_s23, %s1569_s24  ;;  %p1575_p8 = scmp.lt.s32.totalorder %s1573_s5, %s1569_s24 }
  0xf1   : > { %1365 = vpow2.f32 %v677_v33 }
  0xf2   : > { %p1571_p3 = pnand %p1570_p1, %p1791_p4  ;;  %p1576_p10 = por %p1575_p8, %p1574_p6 }
  0xf4   : > { %p1572_p5 = pneg %p1571_p3 }
  0xf5   : > { %v1364_v26 = vpop.eup %1363 }
  0xf6   : > { %v666_v28 = vmul.f32 1.0614054, %v1364_v26  ;;  %p1577_p11 = pnand %p1576_p10, %p1572_p5 }
  0xf7   : > { %v1366_v39 = vpop.eup %1365 }
  0xf8   : > { %v667_v29 = vadd.f32 -1.4531521, %v666_v28 }
  0xfa   : > { %v668_v31 = vmul.f32 %v1364_v26, %v667_v29 }
  0xfc   : > { %v669_v32 = vadd.f32 1.4214138, %v668_v31 }
  0xfe   : > { %v670_v34 = vmul.f32 %v1364_v26, %v669_v32 }
 0x100   : > { %v671_v35 = vadd.f32 -0.28449672, %v670_v34 }
 0x102   : > { %v672_v36 = vmul.f32 %v1364_v26, %v671_v35 }
 0x104   : > { %v673_v37 = vadd.f32 0.2548296, %v672_v36 }
 0x106   : > { %v674_v38 = vmul.f32 %v1364_v26, %v673_v37 }
 0x108   : > { %v679_v40 = vmul.f32 %v1366_v39, %v674_v38 }
 0x10a   : > { %v680_v41 = vsub.f32 1.0, %v679_v40  ;;  %v1362_v40 = vld [vmem:[%s1995_s1] ss:$0 sm:$0xff] }
 0x10c   : > { %v681_v44 = vmul.f32 %v680_v41, %v661_v43 }
 0x10e   : > { %v682_v46 = vadd.f32 1.0, %v681_v44 }
 0x110   : > { %v683_v47 = vmul.f32 %v682_v46, %v658_v45 }
 0x112   : > { %v684_v48 = vpack.c.bf16 %v683_v47, %v683_v47 }
 0x114   : > { %757 = vmatmul.bf16.vlgmr.msra.gmra.mxu1 %v684_v48 }
 0x191   : > { %v758_v50 = vpop.f32.mrf.mxu1 }
 0x192   : > { %v782_v51 = vadd.f32 %v1358_v49, %v758_v50 }
 0x194   : > { %783 = vadd.xlane.f32.xlu0 %v782_v51  ;;  %v785_v53 = vmul.f32 %v782_v51, %v782_v51 }
 0x199   : > { %v760_v52 = vpop.f32.mrf.mxu1 }
 0x19c   : > { %786 = vadd.xlane.f32.xlu0 %v785_v53 }
 0x207   : > { %v784_v54 = vpop.xlane.xlu0 %783 }
 0x208   : > { %v788_v57 = vmul.f32 0.03125, %v784_v54 }
 0x20a   : > { %v790_v60 = vmul.f32 %v788_v57, %v788_v57  ;;  %v792_v13 = vsub.f32 %v782_v51, %v788_v57 }
 0x20f   : > { %v787_v59 = vpop.xlane.xlu0 %786 }
 0x210   : > { %v789_v61 = vmul.f32 0.03125, %v787_v59 }
 0x212   : > { %v791_v62 = vsub.f32 %v789_v61, %v790_v60 }
 0x214   : > { %v793_v0 = vadd.f32 1e-05, %v791_v62 }
 0x216   : > { %1367 = vrsqrt.f32 %v793_v0  ;;  %vm800_vm2 = vweird.f32 %v793_v0 }
 0x21c   : > { %v1368_v3 = vpop.eup %1367 }
 0x21d   : > { %v795_v4 = vmul.f32 %v1368_v3, %v793_v0  ;;  %vm801_vm1 = vweird.f32 %v1368_v3 }
 0x21e   : > { %vm802_vm3 = vmor %vm800_vm2, %vm801_vm1 }
 0x21f   : > { %v796_v6 = vmul.f32 %v1368_v3, %v795_v4 }
 0x221   : > { %v797_v7 = vmul.f32 0.5, %v796_v6 }
 0x223   : > { %v798_v10 = vsub.f32 1.5, %v797_v7 }
 0x225   : > { %v799_v12 = vmul.f32 %v1368_v3, %v798_v10 }
 0x227   : > { %v803_v16 = vsel %vm802_vm3, %v1368_v3, %v799_v12 }
 0x228   : > { %v804_v17 = vmul.f32 %v803_v16, %v792_v13 }
 0x22a   : > { %v809_v19 = vmul.f32 %v1359_v14, %v804_v17 }
 0x22c   : > { %v814_v21 = vadd.f32 %v1360_v18, %v809_v19 }
 0x22e   : > { %v820_v23 = vmul.f32 %v818_v20, %v814_v21 }
 0x230   : > { %v825_v24 = vadd.f32 %v1361_v22, %v820_v23 }
 0x232   : > { %v1190_v25 = vmul.f32 -1.442695, %v825_v24 }
 0x234   : > { %1369 = vpow2.f32 %v1190_v25 }
 0x23a   : > { %v1370_v26 = vpop.eup %1369 }
 0x23b   : > { %v829_v27 = vadd.f32 1.0, %v1370_v26 }
 0x23d   : > { %1371 = vrcp.f32 %v829_v27  ;;  %v841_v31 = vand.u32 2147483648, %v829_v27  ;;  %v839_v33 = vand.u32 2147483647, %v829_v27  ;;  %vm835_vm5 = vweird.f32 %v829_v27 }
 0x23f   : > { %v842_v35 = vor.u32 1.1754944e-38, %v841_v31  ;;  %vm840_vm7 = vcmp.eq.f32.partialorder %v839_v33, 8.507059e+37 }
 0x243   : > { %v1372_v28 = vpop.eup %1371 }
 0x244   : > { %v831_v29 = vmul.f32 %v1372_v28, %v829_v27  ;;  %vm836_vm4 = vweird.f32 %v1372_v28 }
 0x245   : > { %vm837_vm6 = vmor %vm835_vm5, %vm836_vm4 }
 0x246   : > { %v832_v30 = vsub.f32 1.0, %v831_v29 }
 0x248   : > { %v833_v32 = vmul.f32 %v1372_v28, %v832_v30 }
 0x24a   : > { %v834_v34 = vadd.f32 %v1372_v28, %v833_v32 }
 0x24c   : > { %v838_v36 = vsel %vm837_vm6, %v1372_v28, %v834_v34 }
 0x24d   : > { %v843_v37 = vsel %vm840_vm7, %v842_v35, %v838_v36 }
 0x24e   : > { %v845_v38 = vmul.f32 %v843_v37, %v825_v24 }
 0x250   : > { %v846_v39 = vpack.c.bf16 %v845_v38, %v845_v38 }
 0x252   : > { %923 = vmatmul.bf16.vlgmr.msra.gmra.mxu2 %v846_v39 }
 0x2d5   : > { %v924_v41 = vpop.f32.mrf.mxu2 }
 0x2d6   : > { %v925_v42 = vadd.f32 %v1362_v40, %v924_v41 }
 0x2d8   : > { %v928_v43 = vadd.f32 %v925_v42, %v1881_v8 }
 0x2da   : > { %929 = vst [vmem:[%s570_s19] sm:$0xff] %v928_v43 }
 0x2db   : > { %1580 = shalt.err (!%p1577_p11)
}
 0x2dc   : > { %1269 = dma.vmem_to_hbm [thread:$0]  (%p1791_p4), %s945_s27, 128, %s947_s13, %s931_s20  }
 0x2dd   : > { %v926_v8 = vpop.f32.mrf.mxu2 }
 0x2de PF: > { %s1998_s26 = sld [smem:[#allocation20_spill]] }
 0x2df   : > { %s2000_s22 = sld [smem:[#allocation22_spill]] }
 0x2e4   : > { %s958_s25 = sand.u32 1, %s1998_s26  }
 0x2e5   : > { %p2001_p12 = scmp.ge.s32.totalorder %s2000_s22, 2  ;;  %s959_s17 = scalar_lea.sflag [#allocation5], %s958_s25 }
 0x2e7   : > { %p1292_p13 = pnand %p2001_p12, %p1799_p7 }
 0x2e9   : > { %p1293_p0 = pneg %p1292_p13 }
 0x2eb   : > { %1622 = dma.done.wait (%p1293_p0), %s959_s17, 128  }
 0x2ec   : > { %1624 = vsyncadd (%p1293_p0), %s959_s17, 4294967168  ;;  %s32_s22 = sadd.s32 1, %s2000_s22   ;;  %s2002_s30 = sld [smem:[#allocation21_spill]] }
 0x2ed   : > { %p29_p2 = scmp.ge.s32.totalorder %s32_s22, 4   ;;  %s2003_s19 = sld [smem:[#allocation25_spill]] }
 0x2ee   : > { %s2004_s1 = sld [smem:[#allocation23_spill]]  ;;  %s2005_s17 = smov %s1631_s18 }
 0x2ef   : > { %s2007_s20 = smov %s1643_s21 }
 0x2f0   :  { %31 = sbr.rel (!%p29_p2) target bundleno = 17 (0x11), region = 162 }
 0x2f2   : > { %s2006_s18 = smov %s2002_s30 }
 0x2f4   : > { %s2008_s21 = smov %s2004_s1 }
 0x2f5   :  { %965 = vsyncpa [#allocation4], 1 }
 0x2f6   :  { %967 = vsyncpa [#allocation4 + $0x1], 1 }
 0x2f7   :  { %968 = vsyncpa [#allocation7], 1 }
 0x2f8   :  { %970 = vsyncpa [#allocation7 + $0x1], 1 }
 0x2f9   :  { %971 = vsyncpa [#allocation10], 1 }
 0x2fa   :  { %972 = vsyncpa [#allocation13], 1 }
 0x2fb   :  { %973 = vsyncpa [#allocation5], 1 }
 0x2fc   :  { %975 = vsyncpa [#allocation5 + $0x1], 1 }

</bundles_post_ra>
